<compile_context>
chip_gen: v7x
topology: tpu7x:2x2x1
jax: 0.10.0
libtpu: 0.0.40
codegen_flags: <defaults>
</compile_context>

<pallas_src>
import functools

import jax
import jax.numpy as jnp
from jax.experimental import pallas as pl
from jax.experimental.pallas import tpu as pltpu


def _nll_loss_kernel(x_ref, t_ref, o_ref, acc_ref, *, inv_n):
    i = pl.program_id(0)

    @pl.when(i == 0)
    def _():
        acc_ref[...] = jnp.zeros_like(acc_ref)

    x = x_ref[...].astype(jnp.float32)        # (TILE_N, C) logits (upcast in-kernel)
    t = t_ref[...]                            # (TILE_N, 1) int32; -1 marks padded row

    # Numerically-stable logsumexp along the class (lane) axis; keep 2-D shapes.
    m = jnp.max(x, axis=-1, keepdims=True)                               # (TILE_N, 1)
    shifted = x - m                                                      # (TILE_N, C)
    lse = jnp.log(jnp.sum(jnp.exp(shifted), axis=-1, keepdims=True))     # (TILE_N, 1)

    # Gather shifted[i, t[i]] with a masked lane reduce (no logp matrix, no
    # one-hot f32 temporary).
    iota = jax.lax.broadcasted_iota(jnp.int32, x.shape, dimension=1)
    picked = jnp.sum(jnp.where(iota == t, shifted, 0.0),
                     axis=-1, keepdims=True)                             # (TILE_N, 1)

    # -log_softmax(x)[i, t[i]] = lse - picked; exclude padded rows.
    valid = (t >= 0).astype(jnp.float32)                                 # (TILE_N, 1)
    acc_ref[...] += jnp.sum(valid * (lse - picked), axis=0, keepdims=True)

    @pl.when(i == pl.num_programs(0) - 1)
    def _():
        # Multiply by the trace-time constant 1/N instead of dividing.
        o_ref[...] = acc_ref[...] * jnp.float32(inv_n)


def nll_loss(logits, target, *, max_tile_bytes=4 * 1024 * 1024, max_tile_rows=1024):
    """logits: (N, C) float32/bfloat16, target: (N,) int -> scalar float32 mean NLL."""
    n, c = logits.shape
    itemsize = jnp.dtype(logits.dtype).itemsize

    # Pick the largest batch tile (multiple of 8 rows) whose logits slab is
    # <= max_tile_bytes, capped so 2x double-buffers fit all TPU generations.
    tile_n = min(max_tile_rows, max(8, max_tile_bytes // max(1, c * itemsize)))
    tile_n = max(8, (tile_n // 8) * 8)
    n_pad8 = ((n + 7) // 8) * 8
    tile_n = min(tile_n, n_pad8)

    grid_n = (n + tile_n - 1) // tile_n
    n_pad = grid_n * tile_n

    t2d = target.astype(jnp.int32).reshape(n, 1)
    if n_pad != n:
        logits = jnp.pad(logits, ((0, n_pad - n), (0, 0)))
        t2d = jnp.pad(t2d, ((0, n_pad - n), (0, 0)), constant_values=-1)

    kernel = functools.partial(_nll_loss_kernel, inv_n=1.0 / float(n))

    out = pl.pallas_call(
        kernel,
        out_shape=jax.ShapeDtypeStruct((1, 1), jnp.float32),
        grid_spec=pltpu.PrefetchScalarGridSpec(
            num_scalar_prefetch=0,
            grid=(grid_n,),
            in_specs=[
                pl.BlockSpec((tile_n, c), lambda i: (i, 0)),
                pl.BlockSpec((tile_n, 1), lambda i: (i, 0)),
            ],
            out_specs=pl.BlockSpec((1, 1), lambda i: (0, 0)),
            scratch_shapes=[pltpu.VMEM((1, 1), jnp.float32)],
        ),
        compiler_params=pltpu.CompilerParams(
            # Output accumulator is resident across the batch axis -> arbitrary.
            dimension_semantics=("arbitrary",),
            vmem_limit_bytes=32 * 1024 * 1024,
        ),
    )(logits, t2d)
    return out[0, 0]


if __name__ == "__main__":
    key = jax.random.PRNGKey(0)
    k1, k2, k3, k4 = jax.random.split(key, 4)

    # Case 1: small tile-aligned batch (same shape family as the original test).
    N, C = 8, 32
    logits = jax.random.normal(k1, (N, C), dtype=jnp.float32)
    target = jax.random.randint(k2, (N,), 0, C, dtype=jnp.int32)
    loss = nll_loss(logits, target)
    jax.block_until_ready(loss)
    ref = -jnp.mean(jax.nn.log_softmax(logits, axis=-1)[jnp.arange(N), target])
    assert jnp.allclose(loss, ref, atol=1e-5, rtol=1e-5), (loss, ref)

    # Case 2: batch not a multiple of 8 (exercises row padding + valid mask).
    N2, C2 = 13, 20
    logits2 = jax.random.normal(k3, (N2, C2), dtype=jnp.float32)
    target2 = jax.random.randint(k4, (N2,), 0, C2, dtype=jnp.int32)
    loss2 = nll_loss(logits2, target2)
    jax.block_until_ready(loss2)
    ref2 = -jnp.mean(jax.nn.log_softmax(logits2, axis=-1)[jnp.arange(N2), target2])
    assert jnp.allclose(loss2, ref2, atol=1e-5, rtol=1e-5), (loss2, ref2)

    print("KERNEL_OK")
</pallas_src>

<mosaic_0001>
module attributes {stable_mosaic.version = 11 : i64} {
  func.func @_nll_loss_kernel(%arg0: i32, %arg1: memref<8x32xf32, #tpu.memory_space<vmem>>, %arg2: memref<8x1xi32, #tpu.memory_space<vmem>>, %arg3: memref<1x1xf32, #tpu.memory_space<vmem>>, %arg4: memref<1x1xf32, #tpu.memory_space<vmem>>) attributes {dimension_semantics = [#tpu.dimension_semantics<arbitrary>], iteration_bounds = array<i64: 1>, scalar_prefetch = 0 : i64, scratch_operands = 1 : i64, tpu.core_type = #tpu.core_type<tc>, window_params = [{transform_indices = @transform_0, window_bounds = array<i64: 8, 32>}, {transform_indices = @transform_1, window_bounds = array<i64: 8, 1>}, {pipeline_mode = #tpu.pipeline_mode<synchronous>, transform_indices = @transform_2, window_bounds = array<i64: 1, 1>}]} {
    %c0_i32 = arith.constant 0 : i32
    %0 = arith.cmpi eq, %arg0, %c0_i32 : i32
    %1 = arith.extui %0 : i1 to i32
    %c0_i32_0 = arith.constant 0 : i32
    %2 = arith.cmpi ne, %1, %c0_i32_0 : i32
    scf.if %2 {
      %cst_15 = arith.constant 0.000000e+00 : f32
      %34 = vector.broadcast %cst_15 : f32 to vector<1x1xf32>
      %c0_16 = arith.constant 0 : index
      %c0_17 = arith.constant 0 : index
      %35 = vector.load %arg4[%c0_16, %c0_17] : memref<1x1xf32, #tpu.memory_space<vmem>>, vector<1x1xf32>
      tpu.vector_store %arg4[%c0_16, %c0_17], %34 {strides = array<i32>} : memref<1x1xf32, #tpu.memory_space<vmem>>, vector<1x1xf32>,
    } else {
    }
    %c0 = arith.constant 0 : index
    %c0_1 = arith.constant 0 : index
    %3 = vector.load %arg1[%c0, %c0_1] : memref<8x32xf32, #tpu.memory_space<vmem>>, vector<8x32xf32>
    %c0_2 = arith.constant 0 : index
    %c0_3 = arith.constant 0 : index
    %4 = vector.load %arg2[%c0_2, %c0_3] : memref<8x1xi32, #tpu.memory_space<vmem>>, vector<8x1xi32>
    %cst = arith.constant dense<0xFF800000> : vector<8xf32>
    %5 = vector.multi_reduction <maximumf>, %3, %cst [1] : vector<8x32xf32> to vector<8xf32>
    %6 = vector.shape_cast %5 : vector<8xf32> to vector<8x1xf32>
    %7 = vector.broadcast %6 : vector<8x1xf32> to vector<8x32xf32>
    %8 = arith.subf %3, %7 : vector<8x32xf32>
    %9 = math.exp %8 : vector<8x32xf32>
    %cst_4 = arith.constant dense<0.000000e+00> : vector<8xf32>
    %10 = vector.multi_reduction <add>, %9, %cst_4 [1] : vector<8x32xf32> to vector<8xf32>
    %11 = vector.shape_cast %10 : vector<8xf32> to vector<8x1xf32>
    %12 = math.log %11 : vector<8x1xf32>
    %13 = tpu.iota {dimensions = array<i32: 1>} : vector<8x32xi32>
    %14 = vector.broadcast %4 : vector<8x1xi32> to vector<8x32xi32>
    %15 = arith.cmpi eq, %13, %14 : vector<8x32xi32>
    %cst_5 = arith.constant 0.000000e+00 : f32
    %16 = vector.broadcast %cst_5 : f32 to vector<8x32xf32>
    %17 = arith.select %15, %8, %16 : vector<8x32xi1>, vector<8x32xf32>
    %cst_6 = arith.constant dense<0.000000e+00> : vector<8xf32>
    %18 = vector.multi_reduction <add>, %17, %cst_6 [1] : vector<8x32xf32> to vector<8xf32>
    %19 = vector.shape_cast %18 : vector<8xf32> to vector<8x1xf32>
    %c0_i32_7 = arith.constant 0 : i32
    %20 = vector.broadcast %c0_i32_7 : i32 to vector<8x1xi32>
    %21 = arith.cmpi sge, %4, %20 : vector<8x1xi32>
    %22 = arith.extui %21 : vector<8x1xi1> to vector<8x1xi32>
    %23 = arith.sitofp %22 : vector<8x1xi32> to vector<8x1xf32>
    %c0_8 = arith.constant 0 : index
    %c0_9 = arith.constant 0 : index
    %24 = vector.load %arg4[%c0_8, %c0_9] : memref<1x1xf32, #tpu.memory_space<vmem>>, vector<1x1xf32>
    %25 = arith.subf %12, %19 : vector<8x1xf32>
    %26 = arith.mulf %23, %25 : vector<8x1xf32>
    %cst_10 = arith.constant dense<0.000000e+00> : vector<1xf32>
    %27 = vector.multi_reduction <add>, %26, %cst_10 [0] : vector<8x1xf32> to vector<1xf32>
    %28 = vector.shape_cast %27 : vector<1xf32> to vector<1x1xf32>
    %29 = arith.addf %24, %28 : vector<1x1xf32>
    %c0_11 = arith.constant 0 : index
    %c0_12 = arith.constant 0 : index
    %30 = vector.load %arg4[%c0_11, %c0_12] : memref<1x1xf32, #tpu.memory_space<vmem>>, vector<1x1xf32>
    tpu.vector_store %arg4[%c0_11, %c0_12], %29 {strides = array<i32>} : memref<1x1xf32, #tpu.memory_space<vmem>>, vector<1x1xf32>,
    %c0_i32_13 = arith.constant 0 : i32
    %31 = arith.cmpi eq, %arg0, %c0_i32_13 : i32
    %32 = arith.extui %31 : i1 to i32
    %c0_i32_14 = arith.constant 0 : i32
    %33 = arith.cmpi ne, %32, %c0_i32_14 : i32
    scf.if %33 {
      %c0_15 = arith.constant 0 : index
      %c0_16 = arith.constant 0 : index
      %34 = vector.load %arg4[%c0_15, %c0_16] : memref<1x1xf32, #tpu.memory_space<vmem>>, vector<1x1xf32>
      %cst_17 = arith.constant 1.250000e-01 : f32
      %35 = vector.broadcast %cst_17 : f32 to vector<1x1xf32>
      %36 = arith.mulf %34, %35 : vector<1x1xf32>
      %c0_18 = arith.constant 0 : index
      %c0_19 = arith.constant 0 : index
      %37 = vector.load %arg3[%c0_18, %c0_19] : memref<1x1xf32, #tpu.memory_space<vmem>>, vector<1x1xf32>
      tpu.vector_store %arg3[%c0_18, %c0_19], %36 {strides = array<i32>} : memref<1x1xf32, #tpu.memory_space<vmem>>, vector<1x1xf32>,
    } else {
    }
    return
  }
  func.func @transform_0(%arg0: i32) -> (i32, i32) {
    %c0_i32 = arith.constant 0 : i32
    %c0_i32_0 = arith.constant 0 : i32
    return %arg0, %c0_i32 : i32, i32
  }
  func.func @transform_1(%arg0: i32) -> (i32, i32) {
    %c0_i32 = arith.constant 0 : i32
    %c0_i32_0 = arith.constant 0 : i32
    return %arg0, %c0_i32 : i32, i32
  }
  func.func @transform_2(%arg0: i32) -> (i32, i32) {
    %c0_i32 = arith.constant 0 : i32
    %c0_i32_0 = arith.constant 0 : i32
    %c0_i32_1 = arith.constant 0 : i32
    return %c0_i32, %c0_i32_0 : i32, i32
  }
}

</mosaic_0001>

<bundles_post_ra>
// kernel: tpu_custom_call.1
= control target key start
LH: loop header
LB: loop body
LE: loop exit
PB: predicated region body
PF: predicated region fallthrough
CT: control target
= control target key end

     0   :  { %vm20_vm0 = vcmask 261120   ;;  %s154_s0 = inlined_call_operand.vmem [shape: f32[8,32], index: 0, kind: input, shape index: {}]   ;;  %s155_s1 = inlined_call_operand.vmem [shape: s32[8,1], index: 1, kind: input, shape index: {}]   ;;  %s156_s2 = inlined_call_operand.hbm [shape: f32[1,1], index: 2, kind: output, shape index: {}]  }
   0x1   :  { %v18_v0 = vld [vmem:[%s154_s0] sm:$0xff] }
   0x2   :  { %7 = vsyncpa [#allocation4], 0  ;;  %v21_v1 = vsel %vm20_vm0, %v18_v0, -inf  ;;  %v112_v2 = vmov 0   ;;  %v19_v3 = vld [vmem:[%s155_s1] sm:$0xff]  ;;  %v32_v7 = vlaneseq  ;;  %v113_v14 = vmov 0.0  }
   0x3   :  { %83 = vset.pattern.permute.xlu0 %v112_v2  ;;  %vm42_vm2 = vcmp.ge.s32.totalorder %v19_v3, 0  ;;  %vm16_vm3 = vcmask 0   ;;  %vm48_vm4 = vcmask 7168   ;;  %s114_s0 = smov [#allocation3]  }
   0x4   :  { %22 = vmax.xlane.f32.xlu0 %v21_v1  ;;  %v33_v8 = vand.u32 127, %v32_v7  ;;  %v79_v15 = vsel %vm42_vm2, 1.0, %v113_v14  ;;  %17 = vst.msk [vmem:[#allocation2] sm:$0x1] %vm16_vm3, %v113_v14  ;;  %s71_s1 = sshll.u32 %s114_s0, 4  ;;  %s72_s1 = int_to_ptr.vmem [resolvable:$true] %s71_s1 }
   0x5   :  { %s88_s13 = scalar_lea.vmem %s72_s1, 16  ;;  %s92_s14 = scalar_lea.vmem %s72_s1, 32 }
   0x6   :  { %p89_p0 = scmp.ne.s32.totalorder %s72_s1, %s88_s13  ;;  %p93_p1 = scmp.lt.s32.totalorder %s72_s1, %s72_s1 }
   0x7   :  { %p94_p2 = scmp.lt.s32.totalorder %s92_s14, %s88_s13 }
   0x9   :  { %p95_p3 = por %p94_p2, %p93_p1 }
   0xb   :  { %v45_v28 = vld [vmem:[#allocation2] sm:$0x1]  ;;  %p96_p4 = pnand %p95_p3, %p89_p0 }
  0x1a   :  { %35 = vperm.xlu0 %83, %v19_v3  }
  0x91   :  { %v23_v4 = vpop.xlane.xlu0 %22 }
  0x92   :  { %v24_v5 = vsub.f32 %v18_v0, %v23_v4 }
  0x94   :  { %v25_v6 = vmul.f32 1.442695, %v24_v5 }
  0x96   :  { %84 = vpow2.f32 %v25_v6 }
  0x99   :  { %v36_v9 = vpop.permute.xlu0 %35 }
  0x9a   :  { %vm37_vm1 = vcmp.eq.s32.totalorder %v33_v8, %v36_v9 }
  0x9b   :  { %v38_v12 = vsel %vm37_vm1, %v24_v5, 0.0 }
  0x9c   :  { %v39_v13 = vsel %vm20_vm0, %v38_v12, 0.0 }
  0xa0   :  { %v85_v10 = vpop.eup %84 }
  0xa1   :  { %v27_v11 = vsel %vm20_vm0, %v85_v10, 0.0 }
  0xa2   :  { %28 = vadd.xlane.f32.xlu1 %v27_v11 }
  0xa6   :  { %40 = vadd.xlane.f32.xlu1 %v39_v13 }
 0x12f   :  { %v29_v16 = vpop.xlane.xlu1 %28 }
 0x130   :  { %86 = vlog2.f32 %v29_v16 }
 0x133   :  { %v41_v19 = vpop.xlane.xlu1 %40 }
 0x13a   :  { %v87_v17 = vpop.eup %86 }
 0x13b   :  { %v31_v18 = vmul.f32 0.6931472, %v87_v17 }
 0x13d   :  { %v46_v20 = vsub.f32 %v31_v18, %v41_v19 }
 0x13f   :  { %v47_v21 = vmul.f32 %v79_v15, %v46_v20 }
 0x141   :  { %v49_v22 = vsel %vm48_vm4, %v47_v21, 0.0 }
 0x142   :  { %v50_v23 = vrot.slane %v49_v22, 4 }
 0x144   :  { %v51_v24 = vadd.f32 %v50_v23, %v49_v22 }
 0x146   :  { %v52_v25 = vrot.slane %v51_v24, 2 }
 0x148   :  { %v53_v26 = vadd.f32 %v52_v25, %v51_v24 }
 0x14a   :  { %v54_v27 = vrot.slane %v53_v26, 1 }
 0x14c   :  { %v55_v29 = vadd.f32 %v54_v27, %v53_v26 }
 0x14e   :  { %v56_v30 = vadd.f32 %v55_v29, %v45_v28 }
 0x150   :  { %58 = vst.msk [vmem:[#allocation2] sm:$0x1] %vm16_vm3, %v56_v30 }
 0x157   :  { %v62_v31 = vld [vmem:[#allocation2] sm:$0x1] }
 0x158   :  { %v63_v32 = vmul.f32 0.125, %v62_v31 }
 0x15a   :  { %64 = vst.msk [vmem:[#allocation3] sm:$0x1] %vm16_vm3, %v63_v32 }
 0x15b   :  { %99 = shalt.err (!%p96_p4)
}
 0x15c   :  { %s100_s17 = scalar_lea.hbm %s156_s2, 16 }
 0x15d   :  { %p101_p5 = scmp.ne.s32.totalorder %s156_s2, %s100_s17  ;;  %p104_p6 = scmp.lt.u32.totalorder %s100_s17, %s156_s2 }
 0x15f   :  { %p106_p7 = pnand %p104_p6, %p101_p5 }
 0x161   :  { %109 = shalt.err (!%p106_p7)
}
 0x162   :  { %74 = dma.vmem_to_hbm [thread:$0]  %s72_s1, 16, %s156_s2, [#allocation4]  }
 0x163   :  { %110 = dma.done.wait [#allocation4], 16  }
 0x164   :  { %111 = vsyncadd [#allocation4], 4294967280 }
 0x165   :  { %78 = vsyncpa [#allocation4], 1 }

</bundles_post_ra>
